<compile_context>
chip_gen: v6e
topology: v6e:2x2x1
jax: 0.10.0
libtpu: 0.0.40
codegen_flags: <defaults>
</compile_context>

<pallas_src>
import math

import jax
import jax.numpy as jnp
from jax import lax
from jax.experimental import pallas as pl
from jax.experimental.pallas import tpu as pltpu


# ----------------------------- model config ---------------------------------
STATE_DIM = 16
ACTION_DIM = 8
TIME_DIM = 32                      # must be even (sin/cos interleave)
HALF_TIME = TIME_DIM // 2
UNIT = 64
IN_DIM = STATE_DIM + ACTION_DIM + TIME_DIM   # 56
N_HIDDEN = 4                        # linear1..linear4

BATCH = 16
OUT_PAD = 128                       # lane-dense padded output width

# ------------------- packed-parameter slab row offsets ----------------------
# slab64: (SLAB64_ROWS, UNIT) f32 — every 64-wide weight/bias, 8-row aligned.
R_WH = 0                            # hidden weights: rows [l*64, (l+1)*64)
R_W0S = N_HIDDEN * UNIT             # 256: input-layer weight, state rows (16)
R_W0A = R_W0S + STATE_DIM           # 272: input-layer weight, action rows (8)
R_W0TSIN = R_W0A + ACTION_DIM       # 280: input-layer weight, sin-time rows (16)
R_W0TCOS = R_W0TSIN + HALF_TIME     # 296: input-layer weight, cos-time rows (16)
R_B0 = R_W0TCOS + HALF_TIME         # 312: input-layer bias (1 row)
R_BH = 320                          # hidden biases at 320, 328, 336, 344
SLAB64_ROWS = R_BH + 8 * N_HIDDEN   # 352

# slab128: (SLAB128_ROWS, OUT_PAD) f32 — output layer, lane-dense padded.
R_WO = 0                            # rows [0, 64): output weight
R_BO = UNIT                         # row 64: output bias
SLAB128_ROWS = 72

_INV_SQRT2 = 1.0 / math.sqrt(2.0)
_LOG_TERM = -math.log(10000.0) / TIME_DIM


# ------------------------------ Pallas kernel --------------------------------
def _erf_poly(x):
    """Abramowitz & Stegun 7.1.26 erf approximation, |err| <= 1.5e-7.

    Uses only exp + basic VPU arithmetic (guaranteed Mosaic lowering) and
    matches torch's exact-erf GELU numerics to ~1e-7.
    """
    p = 0.3275911
    a1, a2, a3, a4, a5 = (0.254829592, -0.284496736, 1.421413741,
                          -1.453152027, 1.061405429)
    ax = jnp.abs(x)
    t = 1.0 / (1.0 + p * ax)
    poly = ((((a5 * t + a4) * t + a3) * t + a2) * t + a1) * t
    y = 1.0 - poly * jnp.exp(-(ax * ax))
    return jnp.where(x < 0.0, -y, y)


def _gelu_exact(x):
    # F.gelu default (approximate='none'): x * 0.5 * (1 + erf(x / sqrt(2)))
    return x * 0.5 * (1.0 + _erf_poly(x * _INV_SQRT2))


def _diffusion_mlp_kernel(t_ref, state_ref, action_ref, w64_ref, w128_ref,
                          out_ref):
    f32 = jnp.float32

    # ---- in-kernel sinusoidal time encoding (single timestep, SMEM scalar) --
    t_val = t_ref[0].astype(f32)
    k = lax.broadcasted_iota(jnp.int32, (1, HALF_TIME), 1).astype(f32)
    div_term = jnp.exp(k * (2.0 * _LOG_TERM))          # (1, 16)
    ang = t_val * div_term                              # (1, 16)
    sin_e = jnp.sin(ang)
    cos_e = jnp.cos(ang)

    # ---- first layer: split weights, time contribution folded in ------------
    w0_s = w64_ref[R_W0S:R_W0S + STATE_DIM, :]
    w0_a = w64_ref[R_W0A:R_W0A + ACTION_DIM, :]
    w0_ts = w64_ref[R_W0TSIN:R_W0TSIN + HALF_TIME, :]
    w0_tc = w64_ref[R_W0TCOS:R_W0TCOS + HALF_TIME, :]
    b0 = w64_ref[R_B0:R_B0 + 1, :]

    y = (jnp.dot(state_ref[...], w0_s, preferred_element_type=f32)
         + jnp.dot(action_ref[...], w0_a, preferred_element_type=f32)
         + jnp.dot(sin_e, w0_ts, preferred_element_type=f32)
         + jnp.dot(cos_e, w0_tc, preferred_element_type=f32)
         + b0)
    y = _gelu_exact(y)

    # ---- four 64x64 hidden layers (static unroll, slab slices) --------------
    for l in range(N_HIDDEN):
        w = w64_ref[l * UNIT:(l + 1) * UNIT, :]
        b = w64_ref[R_BH + 8 * l:R_BH + 8 * l + 1, :]
        y = _gelu_exact(jnp.dot(y, w, preferred_element_type=f32) + b)

    # ---- output layer, lane-dense padded to OUT_PAD columns -----------------
    wo = w128_ref[R_WO:R_WO + UNIT, :]
    bo = w128_ref[R_BO:R_BO + 1, :]
    out_ref[...] = (jnp.dot(y, wo, preferred_element_type=f32)
                    + bo).astype(out_ref.dtype)


# ------------------------------ wrappers -------------------------------------
def _forward_padded_impl(state, action, t, slab64, slab128):
    # The time-embedding fold assumes a single diffusion timestep; the torch
    # module's `t_emb.repeat(B, 1)` carries the same implicit assumption.
    assert t.shape == (1,), "DIFFUSION forward expects a single timestep t of shape (1,)"
    B = state.shape[0]
    vmem = pl.BlockSpec(memory_space=pltpu.MemorySpace.VMEM)
    smem = pl.BlockSpec(memory_space=pltpu.MemorySpace.SMEM)
    return pl.pallas_call(
        _diffusion_mlp_kernel,
        out_shape=jax.ShapeDtypeStruct((B, OUT_PAD), jnp.float32),
        in_specs=[smem, vmem, vmem, vmem, vmem],
        out_specs=vmem,
    )(t, state, action, slab64, slab128)


# Padded (B, 128) output — use this variant when the consumer can accept the
# lane-dense padded layout (skips the final slice op entirely).
diffusion_forward_padded = jax.jit(_forward_padded_impl)


@jax.jit
def diffusion_forward(state, action, t, slab64, slab128):
    """Matches the torch module's (B, action_dim) output."""
    return _forward_padded_impl(state, action, t, slab64, slab128)[:, :ACTION_DIM]


# ---------------------- one-time parameter packing ---------------------------
def pack_params(params):
    """Pack the 12 Linear tensors into two contiguous VMEM slabs.

    Run ONCE (outside the per-call path): the per-call wrapper then has zero
    packing/padding XLA ops and the kernel sees only 2 weight DMAs.
    """
    (w0, b0, w1, b1, w2, b2, w3, b3, w4, b4, wo, bo) = params

    w0_s = w0[:STATE_DIM]                                   # (16, 64)
    w0_a = w0[STATE_DIM:STATE_DIM + ACTION_DIM]             # (8, 64)
    w0_t = w0[STATE_DIM + ACTION_DIM:]                      # (32, 64)
    w0_t_sin = w0_t[0::2]                                   # rows hit by sin(a_k)
    w0_t_cos = w0_t[1::2]                                   # rows hit by cos(a_k)

    slab64 = jnp.zeros((SLAB64_ROWS, UNIT), jnp.float32)
    for l, w in enumerate((w1, w2, w3, w4)):
        slab64 = slab64.at[R_WH + l * UNIT:R_WH + (l + 1) * UNIT].set(w)
    slab64 = slab64.at[R_W0S:R_W0S + STATE_DIM].set(w0_s)
    slab64 = slab64.at[R_W0A:R_W0A + ACTION_DIM].set(w0_a)
    slab64 = slab64.at[R_W0TSIN:R_W0TSIN + HALF_TIME].set(w0_t_sin)
    slab64 = slab64.at[R_W0TCOS:R_W0TCOS + HALF_TIME].set(w0_t_cos)
    slab64 = slab64.at[R_B0].set(b0[0])
    for l, b in enumerate((b1, b2, b3, b4)):
        slab64 = slab64.at[R_BH + 8 * l].set(b[0])

    slab128 = jnp.zeros((SLAB128_ROWS, OUT_PAD), jnp.float32)
    slab128 = slab128.at[R_WO:R_WO + UNIT, :ACTION_DIM].set(wo)
    slab128 = slab128.at[R_BO, :ACTION_DIM].set(bo[0])
    return slab64, slab128


# ------------------------- deterministic parameter init ----------------------
def init_params(key):
    """PyTorch-style Linear init (uniform +-1/sqrt(fan_in)); weights stored (in, out)."""
    dims = [
        (IN_DIM, UNIT),      # input_layer
        (UNIT, UNIT),        # linear1
        (UNIT, UNIT),        # linear2
        (UNIT, UNIT),        # linear3
        (UNIT, UNIT),        # linear4
        (UNIT, ACTION_DIM),  # output_layer
    ]
    params = []
    for (fan_in, fan_out) in dims:
        key, kw, kb = jax.random.split(key, 3)
        bound = 1.0 / math.sqrt(fan_in)
        w = jax.random.uniform(kw, (fan_in, fan_out), jnp.float32, -bound, bound)
        b = jax.random.uniform(kb, (1, fan_out), jnp.float32, -bound, bound)
        params += [w, b]
    return tuple(params)


# ------------------------------ reference (JAX) -------------------------------
def time_encoding(time_steps, dimension):
    """Matches the torch time_encoding: interleaved sin/cos positional embedding."""
    position = time_steps.astype(jnp.float32)[:, None]                       # (T, 1)
    div_term = jnp.exp(
        jnp.arange(0, dimension, 2, dtype=jnp.float32) * (-math.log(10000.0) / dimension)
    )                                                                        # (dim/2,)
    pe_sin = jnp.sin(position * div_term)
    pe_cos = jnp.cos(position * div_term)
    pe = jnp.stack([pe_sin, pe_cos], axis=-1).reshape(time_steps.shape[0], dimension)
    return pe


def _gelu_ref(x):
    return x * 0.5 * (1.0 + lax.erf(x * _INV_SQRT2))


def diffusion_reference(state, action, t, params):
    """Straight transcription of the torch forward (concat path, exact erf)."""
    B = state.shape[0]
    t_emb = jnp.tile(time_encoding(t, TIME_DIM), (B, 1))
    x = jnp.concatenate([state, action, t_emb], axis=1)
    (w0, b0, w1, b1, w2, b2, w3, b3, w4, b4, wo, bo) = params
    y = _gelu_ref(x @ w0 + b0)
    for (w, b) in ((w1, b1), (w2, b2), (w3, b3), (w4, b4)):
        y = _gelu_ref(y @ w + b)
    return y @ wo + bo


# ---------------------------------- main --------------------------------------
if __name__ == "__main__":
    key = jax.random.PRNGKey(0)
    kp, ks, ka = jax.random.split(key, 3)

    params = init_params(kp)

    # One-time packing (hoisted out of the per-call path).
    slab64, slab128 = pack_params(params)
    slab64 = jax.block_until_ready(slab64)
    slab128 = jax.block_until_ready(slab128)

    state = jax.random.normal(ks, (BATCH, STATE_DIM), jnp.float32)
    action = jax.random.normal(ka, (BATCH, ACTION_DIM), jnp.float32)
    t = jnp.array([5], dtype=jnp.int32)   # single diffusion timestep

    out = diffusion_forward(state, action, t, slab64, slab128)
    out = jax.block_until_ready(out)

    ref = diffusion_reference(state, action, t, params)
    assert out.shape == (BATCH, ACTION_DIM)
    assert jnp.allclose(out, ref, atol=1e-4, rtol=1e-4), "mismatch vs JAX reference"

    print("KERNEL_OK")
</pallas_src>

<mosaic_0001>
module attributes {stable_mosaic.version = 11 : i64} {
  func.func @_diffusion_mlp_kernel(%arg0: memref<1xi32, #tpu.memory_space<smem>>, %arg1: memref<16x16xf32, #tpu.memory_space<vmem>>, %arg2: memref<16x8xf32, #tpu.memory_space<vmem>>, %arg3: memref<352x64xf32, #tpu.memory_space<vmem>>, %arg4: memref<72x128xf32, #tpu.memory_space<vmem>>, %arg5: memref<16x128xf32, #tpu.memory_space<vmem>>) attributes {dimension_semantics = [], scalar_prefetch = 0 : i64, scratch_operands = 0 : i64, tpu.core_type = #tpu.core_type<tc>} {
    %c0 = arith.constant 0 : index
    %0 = memref.load %arg0[%c0] : memref<1xi32, #tpu.memory_space<smem>>
    %1 = arith.sitofp %0 : i32 to f32
    %2 = tpu.iota {dimensions = array<i32: 1>} : vector<1x16xi32>
    %3 = arith.sitofp %2 : vector<1x16xi32> to vector<1x16xf32>
    %cst = arith.constant -0.575646281 : f32
    %4 = vector.broadcast %cst : f32 to vector<1x16xf32>
    %5 = arith.mulf %3, %4 : vector<1x16xf32>
    %6 = math.exp %5 : vector<1x16xf32>
    %7 = vector.broadcast %1 : f32 to vector<1x16xf32>
    %8 = arith.mulf %7, %6 : vector<1x16xf32>
    %9 = math.sin %8 : vector<1x16xf32>
    %10 = math.cos %8 : vector<1x16xf32>
    %c256 = arith.constant 256 : index
    %c0_0 = arith.constant 0 : index
    %11 = vector.load %arg3[%c256, %c0_0] : memref<352x64xf32, #tpu.memory_space<vmem>>, vector<16x64xf32>
    %c272 = arith.constant 272 : index
    %c0_1 = arith.constant 0 : index
    %12 = vector.load %arg3[%c272, %c0_1] : memref<352x64xf32, #tpu.memory_space<vmem>>, vector<8x64xf32>
    %c280 = arith.constant 280 : index
    %c0_2 = arith.constant 0 : index
    %13 = vector.load %arg3[%c280, %c0_2] : memref<352x64xf32, #tpu.memory_space<vmem>>, vector<16x64xf32>
    %c296 = arith.constant 296 : index
    %c0_3 = arith.constant 0 : index
    %14 = vector.load %arg3[%c296, %c0_3] : memref<352x64xf32, #tpu.memory_space<vmem>>, vector<16x64xf32>
    %c312 = arith.constant 312 : index
    %c0_4 = arith.constant 0 : index
    %15 = vector.load %arg3[%c312, %c0_4] : memref<352x64xf32, #tpu.memory_space<vmem>>, vector<1x64xf32>
    %c0_5 = arith.constant 0 : index
    %c0_6 = arith.constant 0 : index
    %16 = vector.load %arg1[%c0_5, %c0_6] : memref<16x16xf32, #tpu.memory_space<vmem>>, vector<16x16xf32>
    %cst_7 = arith.constant dense<0.000000e+00> : vector<16x64xf32>
    %17 = tpu.matmul %16, %11, %cst_7 {dimension_numbers = #tpu.dot_dimension_numbers<[1], [0], [0], [1], [0, 0, 1, 1], [], []>} : vector<16x16xf32>, vector<16x64xf32>, vector<16x64xf32> -> vector<16x64xf32>
    %c0_8 = arith.constant 0 : index
    %c0_9 = arith.constant 0 : index
    %18 = vector.load %arg2[%c0_8, %c0_9] : memref<16x8xf32, #tpu.memory_space<vmem>>, vector<16x8xf32>
    %cst_10 = arith.constant dense<0.000000e+00> : vector<16x64xf32>
    %19 = tpu.matmul %18, %12, %cst_10 {dimension_numbers = #tpu.dot_dimension_numbers<[1], [0], [0], [1], [0, 0, 1, 1], [], []>} : vector<16x8xf32>, vector<8x64xf32>, vector<16x64xf32> -> vector<16x64xf32>
    %20 = arith.addf %17, %19 : vector<16x64xf32>
    %cst_11 = arith.constant dense<0.000000e+00> : vector<1x64xf32>
    %21 = tpu.matmul %9, %13, %cst_11 {dimension_numbers = #tpu.dot_dimension_numbers<[1], [0], [0], [1], [0, 0, 1, 1], [], []>} : vector<1x16xf32>, vector<16x64xf32>, vector<1x64xf32> -> vector<1x64xf32>
    %22 = vector.broadcast %21 : vector<1x64xf32> to vector<16x64xf32>
    %23 = arith.addf %20, %22 : vector<16x64xf32>
    %cst_12 = arith.constant dense<0.000000e+00> : vector<1x64xf32>
    %24 = tpu.matmul %10, %14, %cst_12 {dimension_numbers = #tpu.dot_dimension_numbers<[1], [0], [0], [1], [0, 0, 1, 1], [], []>} : vector<1x16xf32>, vector<16x64xf32>, vector<1x64xf32> -> vector<1x64xf32>
    %25 = vector.broadcast %24 : vector<1x64xf32> to vector<16x64xf32>
    %26 = arith.addf %23, %25 : vector<16x64xf32>
    %27 = vector.broadcast %15 : vector<1x64xf32> to vector<16x64xf32>
    %28 = arith.addf %26, %27 : vector<16x64xf32>
    %cst_13 = arith.constant 5.000000e-01 : f32
    %29 = vector.broadcast %cst_13 : f32 to vector<16x64xf32>
    %30 = arith.mulf %28, %29 : vector<16x64xf32>
    %cst_14 = arith.constant 0.707106769 : f32
    %31 = vector.broadcast %cst_14 : f32 to vector<16x64xf32>
    %32 = arith.mulf %28, %31 : vector<16x64xf32>
    %33 = math.absf %32 : vector<16x64xf32>
    %cst_15 = arith.constant 0.327591091 : f32
    %34 = vector.broadcast %cst_15 : f32 to vector<16x64xf32>
    %35 = arith.mulf %34, %33 : vector<16x64xf32>
    %cst_16 = arith.constant 1.000000e+00 : f32
    %36 = vector.broadcast %cst_16 : f32 to vector<16x64xf32>
    %37 = arith.addf %36, %35 : vector<16x64xf32>
    %cst_17 = arith.constant 1.000000e+00 : f32
    %38 = vector.broadcast %cst_17 : f32 to vector<16x64xf32>
    %39 = arith.divf %38, %37 : vector<16x64xf32>
    %cst_18 = arith.constant 1.06140542 : f32
    %40 = vector.broadcast %cst_18 : f32 to vector<16x64xf32>
    %41 = arith.mulf %40, %39 : vector<16x64xf32>
    %cst_19 = arith.constant -1.45315206 : f32
    %42 = vector.broadcast %cst_19 : f32 to vector<16x64xf32>
    %43 = arith.addf %41, %42 : vector<16x64xf32>
    %44 = arith.mulf %43, %39 : vector<16x64xf32>
    %cst_20 = arith.constant 1.42141378 : f32
    %45 = vector.broadcast %cst_20 : f32 to vector<16x64xf32>
    %46 = arith.addf %44, %45 : vector<16x64xf32>
    %47 = arith.mulf %46, %39 : vector<16x64xf32>
    %cst_21 = arith.constant -0.284496725 : f32
    %48 = vector.broadcast %cst_21 : f32 to vector<16x64xf32>
    %49 = arith.addf %47, %48 : vector<16x64xf32>
    %50 = arith.mulf %49, %39 : vector<16x64xf32>
    %cst_22 = arith.constant 0.254829586 : f32
    %51 = vector.broadcast %cst_22 : f32 to vector<16x64xf32>
    %52 = arith.addf %50, %51 : vector<16x64xf32>
    %53 = arith.mulf %52, %39 : vector<16x64xf32>
    %54 = arith.mulf %33, %33 : vector<16x64xf32>
    %cst_23 = arith.constant 0.000000e+00 : f32
    %55 = vector.broadcast %cst_23 : f32 to vector<16x64xf32>
    %56 = arith.subf %55, %54 : vector<16x64xf32>
    %57 = math.exp %56 : vector<16x64xf32>
    %58 = arith.mulf %53, %57 : vector<16x64xf32>
    %cst_24 = arith.constant 1.000000e+00 : f32
    %59 = vector.broadcast %cst_24 : f32 to vector<16x64xf32>
    %60 = arith.subf %59, %58 : vector<16x64xf32>
    %cst_25 = arith.constant 0.000000e+00 : f32
    %61 = vector.broadcast %cst_25 : f32 to vector<16x64xf32>
    %62 = arith.cmpf olt, %32, %61 : vector<16x64xf32>
    %cst_26 = arith.constant 0.000000e+00 : f32
    %63 = vector.broadcast %cst_26 : f32 to vector<16x64xf32>
    %64 = arith.subf %63, %60 : vector<16x64xf32>
    %65 = arith.select %62, %64, %60 : vector<16x64xi1>, vector<16x64xf32>
    %cst_27 = arith.constant 1.000000e+00 : f32
    %66 = vector.broadcast %cst_27 : f32 to vector<16x64xf32>
    %67 = arith.addf %66, %65 : vector<16x64xf32>
    %68 = arith.mulf %30, %67 : vector<16x64xf32>
    %c0_28 = arith.constant 0 : index
    %c0_29 = arith.constant 0 : index
    %69 = vector.load %arg3[%c0_28, %c0_29] : memref<352x64xf32, #tpu.memory_space<vmem>>, vector<64x64xf32>
    %c320 = arith.constant 320 : index
    %c0_30 = arith.constant 0 : index
    %70 = vector.load %arg3[%c320, %c0_30] : memref<352x64xf32, #tpu.memory_space<vmem>>, vector<1x64xf32>
    %cst_31 = arith.constant dense<0.000000e+00> : vector<16x64xf32>
    %71 = tpu.matmul %68, %69, %cst_31 {dimension_numbers = #tpu.dot_dimension_numbers<[1], [0], [0], [1], [0, 0, 1, 1], [], []>} : vector<16x64xf32>, vector<64x64xf32>, vector<16x64xf32> -> vector<16x64xf32>
    %72 = vector.broadcast %70 : vector<1x64xf32> to vector<16x64xf32>
    %73 = arith.addf %71, %72 : vector<16x64xf32>
    %cst_32 = arith.constant 5.000000e-01 : f32
    %74 = vector.broadcast %cst_32 : f32 to vector<16x64xf32>
    %75 = arith.mulf %73, %74 : vector<16x64xf32>
    %cst_33 = arith.constant 0.707106769 : f32
    %76 = vector.broadcast %cst_33 : f32 to vector<16x64xf32>
    %77 = arith.mulf %73, %76 : vector<16x64xf32>
    %78 = math.absf %77 : vector<16x64xf32>
    %cst_34 = arith.constant 0.327591091 : f32
    %79 = vector.broadcast %cst_34 : f32 to vector<16x64xf32>
    %80 = arith.mulf %79, %78 : vector<16x64xf32>
    %cst_35 = arith.constant 1.000000e+00 : f32
    %81 = vector.broadcast %cst_35 : f32 to vector<16x64xf32>
    %82 = arith.addf %81, %80 : vector<16x64xf32>
    %cst_36 = arith.constant 1.000000e+00 : f32
    %83 = vector.broadcast %cst_36 : f32 to vector<16x64xf32>
    %84 = arith.divf %83, %82 : vector<16x64xf32>
    %cst_37 = arith.constant 1.06140542 : f32
    %85 = vector.broadcast %cst_37 : f32 to vector<16x64xf32>
    %86 = arith.mulf %85, %84 : vector<16x64xf32>
    %cst_38 = arith.constant -1.45315206 : f32
    %87 = vector.broadcast %cst_38 : f32 to vector<16x64xf32>
    %88 = arith.addf %86, %87 : vector<16x64xf32>
    %89 = arith.mulf %88, %84 : vector<16x64xf32>
    %cst_39 = arith.constant 1.42141378 : f32
    %90 = vector.broadcast %cst_39 : f32 to vector<16x64xf32>
    %91 = arith.addf %89, %90 : vector<16x64xf32>
    %92 = arith.mulf %91, %84 : vector<16x64xf32>
    %cst_40 = arith.constant -0.284496725 : f32
    %93 = vector.broadcast %cst_40 : f32 to vector<16x64xf32>
    %94 = arith.addf %92, %93 : vector<16x64xf32>
    %95 = arith.mulf %94, %84 : vector<16x64xf32>
    %cst_41 = arith.constant 0.254829586 : f32
    %96 = vector.broadcast %cst_41 : f32 to vector<16x64xf32>
    %97 = arith.addf %95, %96 : vector<16x64xf32>
    %98 = arith.mulf %97, %84 : vector<16x64xf32>
    %99 = arith.mulf %78, %78 : vector<16x64xf32>
    %cst_42 = arith.constant 0.000000e+00 : f32
    %100 = vector.broadcast %cst_42 : f32 to vector<16x64xf32>
    %101 = arith.subf %100, %99 : vector<16x64xf32>
    %102 = math.exp %101 : vector<16x64xf32>
    %103 = arith.mulf %98, %102 : vector<16x64xf32>
    %cst_43 = arith.constant 1.000000e+00 : f32
    %104 = vector.broadcast %cst_43 : f32 to vector<16x64xf32>
    %105 = arith.subf %104, %103 : vector<16x64xf32>
    %cst_44 = arith.constant 0.000000e+00 : f32
    %106 = vector.broadcast %cst_44 : f32 to vector<16x64xf32>
    %107 = arith.cmpf olt, %77, %106 : vector<16x64xf32>
    %cst_45 = arith.constant 0.000000e+00 : f32
    %108 = vector.broadcast %cst_45 : f32 to vector<16x64xf32>
    %109 = arith.subf %108, %105 : vector<16x64xf32>
    %110 = arith.select %107, %109, %105 : vector<16x64xi1>, vector<16x64xf32>
    %cst_46 = arith.constant 1.000000e+00 : f32
    %111 = vector.broadcast %cst_46 : f32 to vector<16x64xf32>
    %112 = arith.addf %111, %110 : vector<16x64xf32>
    %113 = arith.mulf %75, %112 : vector<16x64xf32>
    %c64 = arith.constant 64 : index
    %c0_47 = arith.constant 0 : index
    %114 = vector.load %arg3[%c64, %c0_47] : memref<352x64xf32, #tpu.memory_space<vmem>>, vector<64x64xf32>
    %c328 = arith.constant 328 : index
    %c0_48 = arith.constant 0 : index
    %115 = vector.load %arg3[%c328, %c0_48] : memref<352x64xf32, #tpu.memory_space<vmem>>, vector<1x64xf32>
    %cst_49 = arith.constant dense<0.000000e+00> : vector<16x64xf32>
    %116 = tpu.matmul %113, %114, %cst_49 {dimension_numbers = #tpu.dot_dimension_numbers<[1], [0], [0], [1], [0, 0, 1, 1], [], []>} : vector<16x64xf32>, vector<64x64xf32>, vector<16x64xf32> -> vector<16x64xf32>
    %117 = vector.broadcast %115 : vector<1x64xf32> to vector<16x64xf32>
    %118 = arith.addf %116, %117 : vector<16x64xf32>
    %cst_50 = arith.constant 5.000000e-01 : f32
    %119 = vector.broadcast %cst_50 : f32 to vector<16x64xf32>
    %120 = arith.mulf %118, %119 : vector<16x64xf32>
    %cst_51 = arith.constant 0.707106769 : f32
    %121 = vector.broadcast %cst_51 : f32 to vector<16x64xf32>
    %122 = arith.mulf %118, %121 : vector<16x64xf32>
    %123 = math.absf %122 : vector<16x64xf32>
    %cst_52 = arith.constant 0.327591091 : f32
    %124 = vector.broadcast %cst_52 : f32 to vector<16x64xf32>
    %125 = arith.mulf %124, %123 : vector<16x64xf32>
    %cst_53 = arith.constant 1.000000e+00 : f32
    %126 = vector.broadcast %cst_53 : f32 to vector<16x64xf32>
    %127 = arith.addf %126, %125 : vector<16x64xf32>
    %cst_54 = arith.constant 1.000000e+00 : f32
    %128 = vector.broadcast %cst_54 : f32 to vector<16x64xf32>
    %129 = arith.divf %128, %127 : vector<16x64xf32>
    %cst_55 = arith.constant 1.06140542 : f32
    %130 = vector.broadcast %cst_55 : f32 to vector<16x64xf32>
    %131 = arith.mulf %130, %129 : vector<16x64xf32>
    %cst_56 = arith.constant -1.45315206 : f32
    %132 = vector.broadcast %cst_56 : f32 to vector<16x64xf32>
    %133 = arith.addf %131, %132 : vector<16x64xf32>
    %134 = arith.mulf %133, %129 : vector<16x64xf32>
    %cst_57 = arith.constant 1.42141378 : f32
    %135 = vector.broadcast %cst_57 : f32 to vector<16x64xf32>
    %136 = arith.addf %134, %135 : vector<16x64xf32>
    %137 = arith.mulf %136, %129 : vector<16x64xf32>
    %cst_58 = arith.constant -0.284496725 : f32
    %138 = vector.broadcast %cst_58 : f32 to vector<16x64xf32>
    %139 = arith.addf %137, %138 : vector<16x64xf32>
    %140 = arith.mulf %139, %129 : vector<16x64xf32>
    %cst_59 = arith.constant 0.254829586 : f32
    %141 = vector.broadcast %cst_59 : f32 to vector<16x64xf32>
    %142 = arith.addf %140, %141 : vector<16x64xf32>
    %143 = arith.mulf %142, %129 : vector<16x64xf32>
    %144 = arith.mulf %123, %123 : vector<16x64xf32>
    %cst_60 = arith.constant 0.000000e+00 : f32
    %145 = vector.broadcast %cst_60 : f32 to vector<16x64xf32>
    %146 = arith.subf %145, %144 : vector<16x64xf32>
    %147 = math.exp %146 : vector<16x64xf32>
    %148 = arith.mulf %143, %147 : vector<16x64xf32>
    %cst_61 = arith.constant 1.000000e+00 : f32
    %149 = vector.broadcast %cst_61 : f32 to vector<16x64xf32>
    %150 = arith.subf %149, %148 : vector<16x64xf32>
    %cst_62 = arith.constant 0.000000e+00 : f32
    %151 = vector.broadcast %cst_62 : f32 to vector<16x64xf32>
    %152 = arith.cmpf olt, %122, %151 : vector<16x64xf32>
    %cst_63 = arith.constant 0.000000e+00 : f32
    %153 = vector.broadcast %cst_63 : f32 to vector<16x64xf32>
    %154 = arith.subf %153, %150 : vector<16x64xf32>
    %155 = arith.select %152, %154, %150 : vector<16x64xi1>, vector<16x64xf32>
    %cst_64 = arith.constant 1.000000e+00 : f32
    %156 = vector.broadcast %cst_64 : f32 to vector<16x64xf32>
    %157 = arith.addf %156, %155 : vector<16x64xf32>
    %158 = arith.mulf %120, %157 : vector<16x64xf32>
    %c128 = arith.constant 128 : index
    %c0_65 = arith.constant 0 : index
    %159 = vector.load %arg3[%c128, %c0_65] : memref<352x64xf32, #tpu.memory_space<vmem>>, vector<64x64xf32>
    %c336 = arith.constant 336 : index
    %c0_66 = arith.constant 0 : index
    %160 = vector.load %arg3[%c336, %c0_66] : memref<352x64xf32, #tpu.memory_space<vmem>>, vector<1x64xf32>
    %cst_67 = arith.constant dense<0.000000e+00> : vector<16x64xf32>
    %161 = tpu.matmul %158, %159, %cst_67 {dimension_numbers = #tpu.dot_dimension_numbers<[1], [0], [0], [1], [0, 0, 1, 1], [], []>} : vector<16x64xf32>, vector<64x64xf32>, vector<16x64xf32> -> vector<16x64xf32>
    %162 = vector.broadcast %160 : vector<1x64xf32> to vector<16x64xf32>
    %163 = arith.addf %161, %162 : vector<16x64xf32>
    %cst_68 = arith.constant 5.000000e-01 : f32
    %164 = vector.broadcast %cst_68 : f32 to vector<16x64xf32>
    %165 = arith.mulf %163, %164 : vector<16x64xf32>
    %cst_69 = arith.constant 0.707106769 : f32
    %166 = vector.broadcast %cst_69 : f32 to vector<16x64xf32>
    %167 = arith.mulf %163, %166 : vector<16x64xf32>
    %168 = math.absf %167 : vector<16x64xf32>
    %cst_70 = arith.constant 0.327591091 : f32
    %169 = vector.broadcast %cst_70 : f32 to vector<16x64xf32>
    %170 = arith.mulf %169, %168 : vector<16x64xf32>
    %cst_71 = arith.constant 1.000000e+00 : f32
    %171 = vector.broadcast %cst_71 : f32 to vector<16x64xf32>
    %172 = arith.addf %171, %170 : vector<16x64xf32>
    %cst_72 = arith.constant 1.000000e+00 : f32
    %173 = vector.broadcast %cst_72 : f32 to vector<16x64xf32>
    %174 = arith.divf %173, %172 : vector<16x64xf32>
    %cst_73 = arith.constant 1.06140542 : f32
    %175 = vector.broadcast %cst_73 : f32 to vector<16x64xf32>
    %176 = arith.mulf %175, %174 : vector<16x64xf32>
    %cst_74 = arith.constant -1.45315206 : f32
    %177 = vector.broadcast %cst_74 : f32 to vector<16x64xf32>
    %178 = arith.addf %176, %177 : vector<16x64xf32>
    %179 = arith.mulf %178, %174 : vector<16x64xf32>
    %cst_75 = arith.constant 1.42141378 : f32
    %180 = vector.broadcast %cst_75 : f32 to vector<16x64xf32>
    %181 = arith.addf %179, %180 : vector<16x64xf32>
    %182 = arith.mulf %181, %174 : vector<16x64xf32>
    %cst_76 = arith.constant -0.284496725 : f32
    %183 = vector.broadcast %cst_76 : f32 to vector<16x64xf32>
    %184 = arith.addf %182, %183 : vector<16x64xf32>
    %185 = arith.mulf %184, %174 : vector<16x64xf32>
    %cst_77 = arith.constant 0.254829586 : f32
    %186 = vector.broadcast %cst_77 : f32 to vector<16x64xf32>
    %187 = arith.addf %185, %186 : vector<16x64xf32>
    %188 = arith.mulf %187, %174 : vector<16x64xf32>
    %189 = arith.mulf %168, %168 : vector<16x64xf32>
    %cst_78 = arith.constant 0.000000e+00 : f32
    %190 = vector.broadcast %cst_78 : f32 to vector<16x64xf32>
    %191 = arith.subf %190, %189 : vector<16x64xf32>
    %192 = math.exp %191 : vector<16x64xf32>
    %193 = arith.mulf %188, %192 : vector<16x64xf32>
    %cst_79 = arith.constant 1.000000e+00 : f32
    %194 = vector.broadcast %cst_79 : f32 to vector<16x64xf32>
    %195 = arith.subf %194, %193 : vector<16x64xf32>
    %cst_80 = arith.constant 0.000000e+00 : f32
    %196 = vector.broadcast %cst_80 : f32 to vector<16x64xf32>
    %197 = arith.cmpf olt, %167, %196 : vector<16x64xf32>
    %cst_81 = arith.constant 0.000000e+00 : f32
    %198 = vector.broadcast %cst_81 : f32 to vector<16x64xf32>
    %199 = arith.subf %198, %195 : vector<16x64xf32>
    %200 = arith.select %197, %199, %195 : vector<16x64xi1>, vector<16x64xf32>
    %cst_82 = arith.constant 1.000000e+00 : f32
    %201 = vector.broadcast %cst_82 : f32 to vector<16x64xf32>
    %202 = arith.addf %201, %200 : vector<16x64xf32>
    %203 = arith.mulf %165, %202 : vector<16x64xf32>
    %c192 = arith.constant 192 : index
    %c0_83 = arith.constant 0 : index
    %204 = vector.load %arg3[%c192, %c0_83] : memref<352x64xf32, #tpu.memory_space<vmem>>, vector<64x64xf32>
    %c344 = arith.constant 344 : index
    %c0_84 = arith.constant 0 : index
    %205 = vector.load %arg3[%c344, %c0_84] : memref<352x64xf32, #tpu.memory_space<vmem>>, vector<1x64xf32>
    %cst_85 = arith.constant dense<0.000000e+00> : vector<16x64xf32>
    %206 = tpu.matmul %203, %204, %cst_85 {dimension_numbers = #tpu.dot_dimension_numbers<[1], [0], [0], [1], [0, 0, 1, 1], [], []>} : vector<16x64xf32>, vector<64x64xf32>, vector<16x64xf32> -> vector<16x64xf32>
    %207 = vector.broadcast %205 : vector<1x64xf32> to vector<16x64xf32>
    %208 = arith.addf %206, %207 : vector<16x64xf32>
    %cst_86 = arith.constant 5.000000e-01 : f32
    %209 = vector.broadcast %cst_86 : f32 to vector<16x64xf32>
    %210 = arith.mulf %208, %209 : vector<16x64xf32>
    %cst_87 = arith.constant 0.707106769 : f32
    %211 = vector.broadcast %cst_87 : f32 to vector<16x64xf32>
    %212 = arith.mulf %208, %211 : vector<16x64xf32>
    %213 = math.absf %212 : vector<16x64xf32>
    %cst_88 = arith.constant 0.327591091 : f32
    %214 = vector.broadcast %cst_88 : f32 to vector<16x64xf32>
    %215 = arith.mulf %214, %213 : vector<16x64xf32>
    %cst_89 = arith.constant 1.000000e+00 : f32
    %216 = vector.broadcast %cst_89 : f32 to vector<16x64xf32>
    %217 = arith.addf %216, %215 : vector<16x64xf32>
    %cst_90 = arith.constant 1.000000e+00 : f32
    %218 = vector.broadcast %cst_90 : f32 to vector<16x64xf32>
    %219 = arith.divf %218, %217 : vector<16x64xf32>
    %cst_91 = arith.constant 1.06140542 : f32
    %220 = vector.broadcast %cst_91 : f32 to vector<16x64xf32>
    %221 = arith.mulf %220, %219 : vector<16x64xf32>
    %cst_92 = arith.constant -1.45315206 : f32
    %222 = vector.broadcast %cst_92 : f32 to vector<16x64xf32>
    %223 = arith.addf %221, %222 : vector<16x64xf32>
    %224 = arith.mulf %223, %219 : vector<16x64xf32>
    %cst_93 = arith.constant 1.42141378 : f32
    %225 = vector.broadcast %cst_93 : f32 to vector<16x64xf32>
    %226 = arith.addf %224, %225 : vector<16x64xf32>
    %227 = arith.mulf %226, %219 : vector<16x64xf32>
    %cst_94 = arith.constant -0.284496725 : f32
    %228 = vector.broadcast %cst_94 : f32 to vector<16x64xf32>
    %229 = arith.addf %227, %228 : vector<16x64xf32>
    %230 = arith.mulf %229, %219 : vector<16x64xf32>
    %cst_95 = arith.constant 0.254829586 : f32
    %231 = vector.broadcast %cst_95 : f32 to vector<16x64xf32>
    %232 = arith.addf %230, %231 : vector<16x64xf32>
    %233 = arith.mulf %232, %219 : vector<16x64xf32>
    %234 = arith.mulf %213, %213 : vector<16x64xf32>
    %cst_96 = arith.constant 0.000000e+00 : f32
    %235 = vector.broadcast %cst_96 : f32 to vector<16x64xf32>
    %236 = arith.subf %235, %234 : vector<16x64xf32>
    %237 = math.exp %236 : vector<16x64xf32>
    %238 = arith.mulf %233, %237 : vector<16x64xf32>
    %cst_97 = arith.constant 1.000000e+00 : f32
    %239 = vector.broadcast %cst_97 : f32 to vector<16x64xf32>
    %240 = arith.subf %239, %238 : vector<16x64xf32>
    %cst_98 = arith.constant 0.000000e+00 : f32
    %241 = vector.broadcast %cst_98 : f32 to vector<16x64xf32>
    %242 = arith.cmpf olt, %212, %241 : vector<16x64xf32>
    %cst_99 = arith.constant 0.000000e+00 : f32
    %243 = vector.broadcast %cst_99 : f32 to vector<16x64xf32>
    %244 = arith.subf %243, %240 : vector<16x64xf32>
    %245 = arith.select %242, %244, %240 : vector<16x64xi1>, vector<16x64xf32>
    %cst_100 = arith.constant 1.000000e+00 : f32
    %246 = vector.broadcast %cst_100 : f32 to vector<16x64xf32>
    %247 = arith.addf %246, %245 : vector<16x64xf32>
    %248 = arith.mulf %210, %247 : vector<16x64xf32>
    %c0_101 = arith.constant 0 : index
    %c0_102 = arith.constant 0 : index
    %249 = vector.load %arg4[%c0_101, %c0_102] : memref<72x128xf32, #tpu.memory_space<vmem>>, vector<64x128xf32>
    %c64_103 = arith.constant 64 : index
    %c0_104 = arith.constant 0 : index
    %250 = vector.load %arg4[%c64_103, %c0_104] : memref<72x128xf32, #tpu.memory_space<vmem>>, vector<1x128xf32>
    %cst_105 = arith.constant dense<0.000000e+00> : vector<16x128xf32>
    %251 = tpu.matmul %248, %249, %cst_105 {dimension_numbers = #tpu.dot_dimension_numbers<[1], [0], [0], [1], [0, 0, 1, 1], [], []>} : vector<16x64xf32>, vector<64x128xf32>, vector<16x128xf32> -> vector<16x128xf32>
    %252 = vector.broadcast %250 : vector<1x128xf32> to vector<16x128xf32>
    %253 = arith.addf %251, %252 : vector<16x128xf32>
    %c0_106 = arith.constant 0 : index
    %c0_107 = arith.constant 0 : index
    %254 = vector.load %arg5[%c0_106, %c0_107] : memref<16x128xf32, #tpu.memory_space<vmem>>, vector<16x128xf32>
    tpu.vector_store %arg5[%c0_106, %c0_107], %253 {strides = array<i32>} : memref<16x128xf32, #tpu.memory_space<vmem>>, vector<16x128xf32>,
    return
  }
}

</mosaic_0001>

<bundles_post_ra>
// kernel: diffusion_forward.1
= control target key start
LH: loop header
LB: loop body
LE: loop exit
PB: predicated region body
PF: predicated region fallthrough
CT: control target
= control target key end

     0   :  { %vm250_vm0 = vcmask 64512   ;;  %v23_v3 = vlaneseq  ;;  %vm332_vm1 = vcmask 130048   ;;  %v1597_v12 = vmov 0.0   ;;  %s1860_s3 = inlined_call_operand.vmem [shape: f32[352,64], index: 3, kind: input, shape index: {}]   ;;  %s1861_s2 = inlined_call_operand.vmem [shape: f32[16,8], index: 2, kind: input, shape index: {}]   ;;  %s1862_s1 = inlined_call_operand.vmem [shape: f32[16,16], index: 1, kind: input, shape index: {}]   ;;  %s1863_s0 = inlined_call_operand.<no memory space> [shape: s32[1], index: 0, kind: input, shape index: {}]   ;;  %s1864_s4 = inlined_call_operand.vmem [shape: f32[72,128], index: 4, kind: input, shape index: {}]   ;;  %s1865_s5 = inlined_call_operand.vmem [shape: f32[16,128], index: 5, kind: output, shape index: {}]  }
   0x1   :  { %v240_v0 = vld [vmem:[%s1860_s3 + $0x110] sm:$0xff]  ;;  %v248_v1 = vld [vmem:[%s1861_s2] sm:$0xff]  ;;  %v249_v2 = vld [vmem:[%s1861_s2 + $0x8] sm:$0xff]  ;;  %vm1598_vm2 = vmmov 0   ;;  %s22_s11 = scvt.s32.f32 %s1863_s0  ;;  %v1599_v29 = vmov 683565275  }
   0x2   :  { %1418 = vmatprep.subr.mxu1 %v240_v0  ;;  %1420 = vmatprep.mubr.msk.f32.mxu1 %vm250_vm0, %v248_v1  ;;  %v239_v4 = vld [vmem:[%s1860_s3 + $0x108] sm:$0xff]  ;;  %v246_v5 = vld [vmem:[%s1862_s1] sm:$0xff]  ;;  %v24_v7 = vand.u32 127, %v23_v3  ;;  %v241_v13 = vld [vmem:[%s1860_s3 + $0x118] sm:$0xff]  ;;  %v1600_v31 = vmov 2475754826  }
   0x3   :  { %1419 = vmatpush3.msra.mxu1 %v240_v0  ;;  %v238_v6 = vld [vmem:[%s1860_s3 + $0x100] sm:$0xff]  ;;  %v247_v8 = vld [vmem:[%s1862_s1 + $0x8] sm:$0xff]  ;;  %v29_v15 = vstv %s22_s11  ;;  %v1601_v33 = vmov 2131351028   ;;  %v1602_v35 = vmov 2102212464  }
   0x4   :  { %1421 = vmatmul.mubr.msk.f32.vlgmr.msra.gmra.mxu1 %vm250_vm0, %v249_v2  ;;  %1423 = vmatprep.subr.mxu1 %v239_v4  ;;  %v25_v9 = vcvt.s32.f32 %v24_v7  ;;  %v242_v10 = vld [vmem:[%s1860_s3 + $0x120] sm:$0xff]  ;;  %v1603_v37 = vmov 920167782   ;;  %v1604_v44 = vmov 1326507024  }
   0x5   :  { %1424 = vmatpush3.msra.mxu1 %v239_v4  ;;  %1427 = vmatprep.mubr.msk.f32.mxu1 %vm332_vm1, %v246_v5 }
   0x6   :  { %1425 = vmatprep.subr.mxu1 %v238_v6  ;;  %v26_v11 = vmul.f32 -0.5756463, %v25_v9 }
   0x7   :  { %1426 = vmatpush3.msra.mxu1 %v238_v6 }
   0x8   :  { %1428 = vmatmul.mubr.msk.f32.vlgmr.msra.gmra.mxu1 %vm332_vm1, %v247_v8  ;;  %1430 = vmatprep.subr.mxu1 %v1597_v12  ;;  %v27_v14 = vmul.f32 1.442695, %v26_v11 }
   0x9   :  { %1431 = vmatpush3.msra.mxu1 %v242_v10  ;;  %1434 = vmatprep.mubr.msk.f32.mxu1 %vm1598_vm2, %v1597_v12 }
   0xa   :  { %1432 = vmatprep.subr.mxu1 %v1597_v12  ;;  %1551 = vpow2.f32 %v27_v14 }
   0xb   :  { %1433 = vmatpush3.msra.mxu1 %v241_v13 }
   0xc   :  { %1437 = vmatprep.subr.mxu1 %v1597_v12 }
  0x17   :  { %v1552_v16 = vpop.eup %1551 }
  0x18   :  { %v1673_v17 = vmul.f32 %v1552_v16, %v29_v15 }
  0x1a   :  { %v34_v18 = vand.u32 2139095040, %v1673_v17  ;;  %v31_v20 = vand.u32 2147483647, %v1673_v17  ;;  %vm33_vm10 = vcmp.lt.s32.totalorder %v1673_v17, 0 }
  0x1c   :  { %v35_v19 = vshrl.u32 %v34_v18, 23  ;;  %v38_v23 = vand.u32 8388607, %v31_v20  ;;  %vm32_vm11 = vcmp.le.f32.partialorder %v31_v20, 0.7853982 }
  0x1e   :  { %v1325_v21 = vadd.s32 4294967169, %v35_v19  ;;  %v39_v26 = vor.u32 8388608, %v38_v23 }
  0x20   :  { %v41_v22 = vadd.s32 1, %v1325_v21  ;;  %v79_v46 = vshll.u32 %v39_v26, 8 }
  0x22   :  { %vm42_vm3 = vcmp.gt.s32.totalorder %v41_v22, 0 }
  0x23   :  { %v43_v24 = vsel %vm42_vm3, %v41_v22, 0 }
  0x24   :  { %v45_v25 = vand.u32 31, %v43_v24  ;;  %v44_v27 = vshrl.u32 %v43_v24, 5 }
  0x26   :  { %v46_v28 = vsub.s32 32, %v45_v25  ;;  %v48_v30 = vshll.u32 %v1599_v29, %v45_v25  ;;  %v51_v32 = vshll.u32 %v1600_v31, %v45_v25  ;;  %v54_v34 = vshll.u32 %v1601_v33, %v45_v25 }
  0x27   :  { %v57_v36 = vshll.u32 %v1602_v35, %v45_v25  ;;  %v60_v38 = vshll.u32 %v1603_v37, %v45_v25  ;;  %vm63_vm4 = vcmp.lt.s32.totalorder %v44_v27, 1  ;;  %vm66_vm5 = vcmp.lt.s32.totalorder %v44_v27, 4 }
  0x28   :  { %v47_v39 = vshrl.u32 %v1599_v29, %v46_v28  ;;  %v49_v40 = vshrl.u32 %v1600_v31, %v46_v28  ;;  %v52_v41 = vshrl.u32 %v1601_v33, %v46_v28  ;;  %v55_v42 = vshrl.u32 %v1602_v35, %v46_v28 }
  0x29   :  { %v58_v43 = vshrl.u32 %v1603_v37, %v46_v28  ;;  %v61_v45 = vshrl.u32 %v1604_v44, %v46_v28  ;;  %vm64_vm6 = vcmp.lt.s32.totalorder %v44_v27, 2  ;;  %vm65_vm7 = vcmp.lt.s32.totalorder %v44_v27, 3 }
  0x2a   :  { %v50_v47 = vor.u32 %v49_v40, %v48_v30  ;;  %v53_v48 = vor.u32 %v52_v41, %v51_v32  ;;  %v56_v49 = vor.u32 %v55_v42, %v54_v34 }
  0x2b   :  { %v59_v50 = vor.u32 %v58_v43, %v57_v36  ;;  %v62_v51 = vor.u32 %v61_v45, %v60_v38 }
  0x2c   :  { %v67_v52 = vsel %vm63_vm4, %v47_v39, %v50_v47  ;;  %v68_v53 = vsel %vm66_vm5, %v56_v49, 2102212464  ;;  %v71_v54 = vsel %vm63_vm4, %v50_v47, %v53_v48  ;;  %v75_v55 = vsel %vm63_vm4, %v53_v48, %v56_v49 }
  0x2d   :  { %v69_v56 = vsel %vm65_vm7, %v53_v48, %v68_v53  ;;  %v72_v57 = vsel %vm66_vm5, %v59_v50, 920167782  ;;  %v76_v58 = vsel %vm66_vm5, %v62_v51, 1326507024  ;;  %vm123_vm4 = vweird.f32 %v1673_v17  ;;  %v243_v53 = vld [vmem:[%s1860_s3 + $0x128] sm:$0xff] }
  0x2e   :  { %v73_v59 = vsel %vm65_vm7, %v56_v49, %v72_v57  ;;  %v77_v60 = vsel %vm65_vm7, %v59_v50, %v76_v58  ;;  %v70_v61 = vsel %vm64_vm6, %v67_v52, %v69_v56  ;;  %v244_v50 = vld [vmem:[%s1860_s3 + $0x130] sm:$0xff]  ;;  %v637_v56 = vld [vmem:[%s1860_s3 + $0x28] sm:$0xff]  ;;  %v635_v57 = vld [vmem:[%s1860_s3 + $0x18] sm:$0xff]  ;;  %vm645_vm5 = vcmask 523264  }
  0x2f   :  { %v74_v62 = vsel %vm64_vm6, %v71_v54, %v73_v59  ;;  %v78_v63 = vsel %vm64_vm6, %v75_v55, %v77_v60  ;;  %v86_v5 = vmul.u32 %v79_v46, %v70_v61  ;;  %v639_v54 = vld [vmem:[%s1860_s3 + $0x38] sm:$0xff]  ;;  %v638_v55 = vld [vmem:[%s1860_s3 + $0x30] sm:$0xff]  ;;  %v633_v59 = vld [vmem:[%s1860_s3 + $0x8] sm:$0xff] }
  0x30   :  { %v1679_v0 = vmul.u32.u64.low %v79_v46, %v78_v63  ;;  %v1680_v1 = vmul.u32.u64.high %v79_v46, %v78_v63, %v1679_v0  ;;  %v1682_v2 = vmul.u32.u64.low %v79_v46, %v74_v62  ;;  %v1683_v4 = vmul.u32.u64.high %v79_v46, %v74_v62, %v1682_v2  ;;  %1444 = vmatprep.subr.mxu0 %v639_v54  ;;  %v634_v58 = vld [vmem:[%s1860_s3 + $0x10] sm:$0xff]  ;;  %v632_v60 = vld [vmem:[%s1860_s3] sm:$0xff] }
  0x31   :  { %1445 = vmatpush3.msra.mxu0 %v639_v54  ;;  %v488_v63 = vshrl.u32 %v23_v3, 7 }
  0x32   :  { %vm88_vm8 = vc.u32 %v1680_v1, %v1682_v2  ;;  %v89_v6 = vadd.s32 1, %v1683_v4  ;;  %v87_v19 = vadd.s32 %v1682_v2, %v1680_v1  ;;  %1446 = vmatprep.subr.mxu0 %v638_v55 }
  0x33   :  { %1447 = vmatpush3.msra.mxu0 %v638_v55  ;;  %v489_v1 = vsub.s32 0, %v488_v63 }
  0x34   :  { %v90_v7 = vsel %vm88_vm8, %v89_v6, %v1683_v4  ;;  %1448 = vmatprep.subr.mxu0 %v637_v56 }
  0x35   :  { %v91_v8 = vadd.s32 %v90_v7, %v86_v5  ;;  %1449 = vmatpush3.msra.mxu0 %v637_v56 }
  0x37   :  { %v92_v9 = vadd.s32 536870912, %v91_v8 }
  0x39   :  { %v93_v10 = vshrl.u32 %v92_v9, 30 }
  0x3b   :  { %v94_v11 = vshll.u32 %v93_v10, 30  ;;  %v117_v33 = vsub.s32 4, %v93_v10 }
  0x3d   :  { %v95_v13 = vsub.s32 %v91_v8, %v94_v11  ;;  %v118_v36 = vsel %vm33_vm10, %v117_v33, %v93_v10 }
  0x3e   :  { %v120_v38 = vsel %vm32_vm11, 0, %v118_v36 }
  0x3f   :  { %v97_v14 = vsub.s32 0, %v95_v13  ;;  %v124_v39 = vadd.s32 3, %v120_v38  ;;  %v228_v41 = vand.u32 3, %v120_v38 }
  0x41   :  { %v1326_v15 = vmin.u32 %v97_v14, %v95_v13  ;;  %v125_v40 = vand.u32 3, %v124_v39  ;;  %vm233_vm13 = vcmp.eq.s32.totalorder %v228_v41, 2  ;;  %vm230_vm15 = vcmp.eq.s32.totalorder %v228_v41, 0  ;;  %v1339_v14 = vld [vmem:[%s1860_s3 + $0x138] ss:$0 sm:$0xff] }
  0x42   :  { %vm229_vm3 = vcmp.lt.s32.totalorder %v228_v41, 2 }
  0x43   :  { %v99_v16 = vclz %v1326_v15  ;;  %vm130_vm12 = vcmp.eq.s32.totalorder %v125_v40, 2  ;;  %vm127_vm14 = vcmp.eq.s32.totalorder %v125_v40, 0  ;;  %vm126_vm0 = vcmp.lt.s32.totalorder %v125_v40, 2 }
  0x45   :  { %v1327_v18 = vadd.s32 4294967294, %v99_v16 }
  0x47   :  { %vm1328_vm9 = vcmp.lt.s32.totalorder %v1327_v18, 0 }
  0x48   :  { %v102_v21 = vsel %vm1328_vm9, 0, %v1327_v18 }
  0x49   :  { %v103_v22 = vsub.s32 32, %v102_v21  ;;  %v104_v23 = vshll.u32 %v95_v13, %v102_v21  ;;  %v107_v24 = vsub.s32 4294967266, %v102_v21 }
  0x4b   :  { %v105_v25 = vshrl.u32 %v87_v19, %v103_v22  ;;  %v108_v26 = vadd.s32 127, %v107_v24 }
  0x4d   :  { %v106_v27 = vor.u32 %v105_v25, %v104_v23  ;;  %v109_v28 = vshll.u32 %v108_v26, 23 }
  0x4f   :  { %v110_v29 = vor.u32 4788187, %v109_v28  ;;  %v113_v30 = vcvt.s32.f32 %v106_v27 }
  0x51   :  { %v111_v31 = vand.u32 2147483647, %v110_v29 }
  0x53   :  { %v114_v32 = vmul.f32 %v113_v30, %v111_v31 }
  0x55   :  { %v115_v34 = vxor.u32 2147483648, %v114_v32 }
  0x57   :  { %v116_v35 = vsel %vm33_vm10, %v115_v34, %v114_v32 }
  0x58   :  { %v119_v37 = vsel %vm32_vm11, %v1673_v17, %v116_v35 }
  0x59   :  { %1553 = vcosq.f32 %v119_v37 }
  0x5a   :  { %1555 = vsinq.f32 %v119_v37 }
  0x66   :  { %v1554_v42 = vpop.eup %1553 }
  0x67   :  { %v1556_v43 = vpop.eup %1555  ;;  %v131_v44 = vxor.u32 2147483648, %v1554_v42 }
  0x68   :  { %v128_v20 = vxor.u32 2147483648, %v1556_v43 }
  0x69   :  { %v132_v45 = vsel %vm130_vm12, %v131_v44, %v1556_v43  ;;  %v235_v46 = vsel %vm233_vm13, %v131_v44, %v1556_v43 }
  0x6a   :  { %v129_v47 = vsel %vm127_vm14, %v1554_v42, %v128_v20  ;;  %v232_v48 = vsel %vm230_vm15, %v1554_v42, %v128_v20 }
  0x6b   :  { %v133_v49 = vsel %vm126_vm0, %v129_v47, %v132_v45  ;;  %v236_v51 = vsel %vm229_vm3, %v232_v48, %v235_v46 }
  0x6c   :  { %v134_v52 = vsel %vm123_vm4, nan, %v133_v49  ;;  %v237_v17 = vsel %vm123_vm4, nan, %v236_v51 }
  0x6d   :  { %1435 = vmatmul.mubr.msk.f32.vlgmr.msra.gmra.mxu1 %vm332_vm1, %v134_v52 }
  0x6e   :  { %1438 = vmatpush3.msra.mxu1 %v244_v50  ;;  %1441 = vmatprep.mubr.msk.f32.mxu1 %vm1598_vm2, %v1597_v12 }
  0x6f   :  { %1439 = vmatprep.subr.mxu1 %v1597_v12  ;;  %v636_v12 = vld [vmem:[%s1860_s3 + $0x20] sm:$0xff] }
  0x70   :  { %1440 = vmatpush3.msra.mxu1 %v243_v53  ;;  %1450 = vmatprep.subr.mxu0 %v636_v12 }
  0x71   :  { %1442 = vmatmul.mubr.msk.f32.vlgmr.msra.gmra.mxu1 %vm332_vm1, %v237_v17  ;;  %1451 = vmatpush3.msra.mxu0 %v636_v12 }
  0x72   :  { %1452 = vmatprep.subr.mxu0 %v635_v57 }
  0x73   :  { %1453 = vmatpush3.msra.mxu0 %v635_v57 }
  0x74   :  { %1454 = vmatprep.subr.mxu0 %v634_v58 }
  0x75   :  { %1455 = vmatpush3.msra.mxu0 %v634_v58 }
  0x76   :  { %1456 = vmatprep.subr.mxu0 %v633_v59 }
  0x77   :  { %1457 = vmatpush3.msra.mxu0 %v633_v59 }
  0x78   :  { %1458 = vmatprep.subr.mxu0 %v632_v60 }
  0x79   :  { %1459 = vmatpush3.msra.mxu0 %v632_v60 }
  0xc4   :  { %v1422_v61 = vpop.f32.mrf.mxu1 }
  0xc6   :  { %v323_v62 = vpop.f32.mrf.mxu1 }
  0xc8   :  { %v1429_v0 = vpop.f32.mrf.mxu1 }
  0xc9   :  { %v411_v7 = vadd.f32 %v1429_v0, %v1422_v61 }
  0xca   :  { %v405_v2 = vpop.f32.mrf.mxu1 }
  0xcb   :  { %v406_v8 = vadd.f32 %v405_v2, %v323_v62 }
 0x12d   :  { %v483_v4 = vpop.f32.mrf.mxu1 }
 0x12e   :  { %v490_v5 = vrot.slane %v483_v4, %v489_v1 }
 0x12f   :  { %v1436_v6 = vpop.f32.mrf.mxu1 }
 0x130   :  { %v491_v10 = vadd.f32 %v490_v5, %v406_v8  ;;  %v492_v11 = vadd.f32 %v490_v5, %v411_v7  ;;  %v788_v5 = vld [vmem:[%s1860_s3 + $0x78] sm:$0xff]  ;;  %v787_v6 = vld [vmem:[%s1860_s3 + $0x70] sm:$0xff]  ;;  %v786_v7 = vld [vmem:[%s1860_s3 + $0x68] sm:$0xff] }
 0x131   :  { %v562_v9 = vpop.f32.mrf.mxu1  ;;  %1463 = vmatprep.subr.mxu1 %v788_v5  ;;  %v785_v8 = vld [vmem:[%s1860_s3 + $0x60] sm:$0xff] }
 0x132   :  { %v569_v13 = vrot.slane %v562_v9, %v489_v1  ;;  %1464 = vmatpush3.msra.mxu1 %v788_v5  ;;  %v784_v9 = vld [vmem:[%s1860_s3 + $0x58] sm:$0xff]  ;;  %v935_v5 = vld [vmem:[%s1860_s3 + $0xb0] sm:$0xff] }
 0x133   :  { %v1443_v15 = vpop.f32.mrf.mxu1  ;;  %1465 = vmatprep.subr.mxu1 %v787_v6 }
 0x134   :  { %v570_v16 = vadd.f32 %v569_v13, %v491_v10  ;;  %v571_v18 = vadd.f32 %v569_v13, %v492_v11  ;;  %1466 = vmatpush3.msra.mxu1 %v787_v6  ;;  %v783_v10 = vld [vmem:[%s1860_s3 + $0x50] sm:$0xff]  ;;  %v782_v11 = vld [vmem:[%s1860_s3 + $0x48] sm:$0xff]  ;;  %v781_v13 = vld [vmem:[%s1860_s3 + $0x40] sm:$0xff] }
 0x135   :  { %1467 = vmatprep.subr.mxu1 %v786_v7  ;;  %v934_v6 = vld [vmem:[%s1860_s3 + $0xa8] sm:$0xff] }
 0x136   :  { %v576_v3 = vadd.f32 %v1339_v14, %v570_v16  ;;  %v577_v19 = vadd.f32 %v1339_v14, %v571_v18  ;;  %1468 = vmatpush3.msra.mxu1 %v786_v7  ;;  %v1340_v14 = vld [vmem:[%s1860_s3 + $0x140] ss:$0 sm:$0xff] }
 0x137   :  { %1469 = vmatprep.subr.mxu1 %v785_v8  ;;  %v933_v7 = vld [vmem:[%s1860_s3 + $0xa0] sm:$0xff] }
 0x138   :  { %v580_v21 = vmul.f32 0.70710677, %v576_v3  ;;  %v581_v22 = vmul.f32 0.70710677, %v577_v19  ;;  %v578_v61 = vmul.f32 0.5, %v576_v3  ;;  %v579_v0 = vmul.f32 0.5, %v577_v19  ;;  %1470 = vmatpush3.msra.mxu1 %v785_v8 }
 0x139   :  { %1471 = vmatprep.subr.mxu1 %v784_v9  ;;  %v932_v8 = vld [vmem:[%s1860_s3 + $0x98] sm:$0xff] }
 0x13a   :  { %v582_v23 = vand.u32 2147483647, %v580_v21  ;;  %v583_v24 = vand.u32 2147483647, %v581_v22  ;;  %vm622_vm1 = vcmp.lt.f32.partialorder %v580_v21, 0.0  ;;  %vm623_vm2 = vcmp.lt.f32.partialorder %v581_v22, 0.0  ;;  %1472 = vmatpush3.msra.mxu1 %v784_v9 }
 0x13b   :  { %1473 = vmatprep.subr.mxu1 %v783_v10  ;;  %v931_v9 = vld [vmem:[%s1860_s3 + $0x90] sm:$0xff] }
 0x13c   :  { %v584_v25 = vmul.f32 0.3275911, %v582_v23  ;;  %v585_v26 = vmul.f32 0.3275911, %v583_v24  ;;  %v610_v29 = vmul.f32 %v582_v23, %v582_v23  ;;  %v611_v30 = vmul.f32 %v583_v24, %v583_v24  ;;  %1474 = vmatpush3.msra.mxu1 %v783_v10  ;;  %v930_v10 = vld [vmem:[%s1860_s3 + $0x88] sm:$0xff] }
 0x13d   :  { %1475 = vmatprep.subr.mxu1 %v782_v11 }
 0x13e   :  { %v586_v27 = vadd.f32 1.0, %v584_v25  ;;  %v587_v28 = vadd.f32 1.0, %v585_v26  ;;  %v612_v31 = vsub.f32 0.0, %v610_v29  ;;  %v613_v32 = vsub.f32 0.0, %v611_v30  ;;  %1476 = vmatpush3.msra.mxu1 %v782_v11  ;;  %v929_v11 = vld [vmem:[%s1860_s3 + $0x80] sm:$0xff] }
 0x13f   :  { %1477 = vmatprep.subr.mxu1 %v781_v13 }
 0x140   :  { %1557 = vrcp.f32 %v586_v27  ;;  %v614_v35 = vmul.f32 1.442695, %v612_v31  ;;  %v616_v37 = vmul.f32 1.442695, %v613_v32  ;;  %1478 = vmatpush3.msra.mxu1 %v781_v13  ;;  %v1343_v13 = vld [vmem:[%s1860_s3 + $0x148] ss:$0 sm:$0xff] }
 0x141   :  { %1559 = vrcp.f32 %v587_v28 }
 0x142   :  { %1561 = vpow2.f32 %v614_v35 }
 0x143   :  { %1563 = vpow2.f32 %v616_v37 }
 0x14d   :  { %v1558_v33 = vpop.eup %1557 }
 0x14e   :  { %v1560_v34 = vpop.eup %1559  ;;  %v592_v36 = vmul.f32 1.0614054, %v1558_v33 }
 0x14f   :  { %v593_v38 = vmul.f32 1.0614054, %v1560_v34  ;;  %v1562_v53 = vpop.eup %1561 }
 0x150   :  { %v594_v39 = vadd.f32 -1.4531521, %v592_v36  ;;  %v1564_v54 = vpop.eup %1563 }
 0x151   :  { %v595_v40 = vadd.f32 -1.4531521, %v593_v38 }
 0x152   :  { %v596_v41 = vmul.f32 %v1558_v33, %v594_v39 }
 0x153   :  { %v597_v42 = vmul.f32 %v1560_v34, %v595_v40 }
 0x154   :  { %v598_v43 = vadd.f32 1.4214138, %v596_v41 }
 0x155   :  { %v599_v44 = vadd.f32 1.4214138, %v597_v42 }
 0x156   :  { %v600_v20 = vmul.f32 %v1558_v33, %v598_v43 }
 0x157   :  { %v601_v45 = vmul.f32 %v1560_v34, %v599_v44 }
 0x158   :  { %v602_v46 = vadd.f32 -0.28449672, %v600_v20 }
 0x159   :  { %v603_v47 = vadd.f32 -0.28449672, %v601_v45 }
 0x15a   :  { %v604_v48 = vmul.f32 %v1558_v33, %v602_v46 }
 0x15b   :  { %v605_v49 = vmul.f32 %v1560_v34, %v603_v47 }
 0x15c   :  { %v606_v50 = vadd.f32 0.2548296, %v604_v48 }
 0x15d   :  { %v607_v51 = vadd.f32 0.2548296, %v605_v49 }
 0x15e   :  { %v608_v52 = vmul.f32 %v1558_v33, %v606_v50 }
 0x15f   :  { %v609_v17 = vmul.f32 %v1560_v34, %v607_v51 }
 0x160   :  { %v618_v55 = vmul.f32 %v1562_v53, %v608_v52 }
 0x161   :  { %v619_v56 = vmul.f32 %v1564_v54, %v609_v17 }
 0x162   :  { %v620_v12 = vsub.f32 1.0, %v618_v55 }
 0x163   :  { %v621_v57 = vsub.f32 1.0, %v619_v56 }
 0x164   :  { %v624_v58 = vsub.f32 0.0, %v620_v12 }
 0x165   :  { %v625_v59 = vsub.f32 0.0, %v621_v57 }
 0x166   :  { %v626_v60 = vsel %vm622_vm1, %v624_v58, %v620_v12 }
 0x167   :  { %v628_v62 = vadd.f32 1.0, %v626_v60  ;;  %v627_v63 = vsel %vm623_vm2, %v625_v59, %v621_v57 }
 0x168   :  { %v629_v1 = vadd.f32 1.0, %v627_v63 }
 0x169   :  { %v630_v2 = vmul.f32 %v628_v62, %v578_v61 }
 0x16a   :  { %v631_v4 = vmul.f32 %v629_v1, %v579_v0 }
 0x16b   :  { %1460 = vmatprep.mubr.msk.f32.mxu0 %vm645_vm5, %v630_v2 }
 0x16c   :  { %1461 = vmatmul.mubr.msk.f32.vlgmr.msra.gmra.mxu0 %vm645_vm5, %v631_v4  ;;  %v936_v4 = vld [vmem:[%s1860_s3 + $0xb8] sm:$0xff] }
 0x16d   :  { %1482 = vmatprep.subr.mxu0 %v936_v4 }
 0x16e   :  { %1483 = vmatpush3.msra.mxu0 %v936_v4  ;;  %v1083_v4 = vld [vmem:[%s1860_s3 + $0xf0] sm:$0xff] }
 0x16f   :  { %1484 = vmatprep.subr.mxu0 %v935_v5 }
 0x170   :  { %1485 = vmatpush3.msra.mxu0 %v935_v5  ;;  %v1082_v5 = vld [vmem:[%s1860_s3 + $0xe8] sm:$0xff] }
 0x171   :  { %1486 = vmatprep.subr.mxu0 %v934_v6 }
 0x172   :  { %1487 = vmatpush3.msra.mxu0 %v934_v6  ;;  %v1081_v6 = vld [vmem:[%s1860_s3 + $0xe0] sm:$0xff] }
 0x173   :  { %1488 = vmatprep.subr.mxu0 %v933_v7 }
 0x174   :  { %1489 = vmatpush3.msra.mxu0 %v933_v7  ;;  %v1080_v7 = vld [vmem:[%s1860_s3 + $0xd8] sm:$0xff] }
 0x175   :  { %1490 = vmatprep.subr.mxu0 %v932_v8 }
 0x176   :  { %1491 = vmatpush3.msra.mxu0 %v932_v8  ;;  %v1079_v8 = vld [vmem:[%s1860_s3 + $0xd0] sm:$0xff] }
 0x177   :  { %1492 = vmatprep.subr.mxu0 %v931_v9 }
 0x178   :  { %1493 = vmatpush3.msra.mxu0 %v931_v9  ;;  %v1078_v9 = vld [vmem:[%s1860_s3 + $0xc8] sm:$0xff] }
 0x179   :  { %1494 = vmatprep.subr.mxu0 %v930_v10 }
 0x17a   :  { %1495 = vmatpush3.msra.mxu0 %v930_v10  ;;  %v1077_v10 = vld [vmem:[%s1860_s3 + $0xc0] sm:$0xff] }
 0x17b   :  { %1496 = vmatprep.subr.mxu0 %v929_v11 }
 0x17c   :  { %1497 = vmatpush3.msra.mxu0 %v929_v11  ;;  %v1346_v11 = vld [vmem:[%s1860_s3 + $0x150] ss:$0 sm:$0xff] }
 0x22c   :  { %v1462_v15 = vpop.f32.mrf.mxu0 }
 0x22d   :  { %v724_v16 = vadd.f32 %v1462_v15, %v1340_v14 }
 0x22e   :  { %v718_v18 = vpop.f32.mrf.mxu0 }
 0x22f   :  { %v730_v3 = vmul.f32 0.70710677, %v724_v16  ;;  %v719_v19 = vadd.f32 %v1340_v14, %v718_v18  ;;  %v728_v0 = vmul.f32 0.5, %v724_v16 }
 0x231   :  { %v732_v21 = vand.u32 2147483647, %v730_v3  ;;  %v729_v22 = vmul.f32 0.70710677, %v719_v19  ;;  %vm772_vm6 = vcmp.lt.f32.partialorder %v730_v3, 0.0  ;;  %v727_v62 = vmul.f32 0.5, %v719_v19 }
 0x233   :  { %v734_v23 = vmul.f32 0.3275911, %v732_v21  ;;  %v731_v24 = vand.u32 2147483647, %v729_v22  ;;  %v760_v28 = vmul.f32 %v732_v21, %v732_v21  ;;  %vm771_vm7 = vcmp.lt.f32.partialorder %v729_v22, 0.0 }
 0x235   :  { %v736_v25 = vadd.f32 1.0, %v734_v23  ;;  %v733_v26 = vmul.f32 0.3275911, %v731_v24  ;;  %v759_v29 = vmul.f32 %v731_v24, %v731_v24  ;;  %v762_v30 = vsub.f32 0.0, %v760_v28 }
 0x237   :  { %1565 = vrcp.f32 %v736_v25  ;;  %v735_v27 = vadd.f32 1.0, %v733_v26  ;;  %v761_v32 = vsub.f32 0.0, %v759_v29  ;;  %v765_v34 = vmul.f32 1.442695, %v762_v30 }
 0x239   :  { %1567 = vrcp.f32 %v735_v27  ;;  %v763_v38 = vmul.f32 1.442695, %v761_v32 }
 0x23a   :  { %1569 = vpow2.f32 %v765_v34 }
 0x23b   :  { %1571 = vpow2.f32 %v763_v38 }
 0x244   :  { %v1566_v31 = vpop.eup %1565 }
 0x245   :  { %v742_v33 = vmul.f32 1.0614054, %v1566_v31 }
 0x246   :  { %v1568_v35 = vpop.eup %1567 }
 0x247   :  { %v744_v36 = vadd.f32 -1.4531521, %v742_v33  ;;  %v741_v37 = vmul.f32 1.0614054, %v1568_v35  ;;  %v1570_v51 = vpop.eup %1569 }
 0x248   :  { %v1572_v54 = vpop.eup %1571 }
 0x249   :  { %v746_v39 = vmul.f32 %v1566_v31, %v744_v36  ;;  %v743_v40 = vadd.f32 -1.4531521, %v741_v37 }
 0x24b   :  { %v748_v41 = vadd.f32 1.4214138, %v746_v39  ;;  %v745_v42 = vmul.f32 %v1568_v35, %v743_v40 }
 0x24d   :  { %v750_v43 = vmul.f32 %v1566_v31, %v748_v41  ;;  %v747_v44 = vadd.f32 1.4214138, %v745_v42 }
 0x24f   :  { %v752_v20 = vadd.f32 -0.28449672, %v750_v43  ;;  %v749_v45 = vmul.f32 %v1568_v35, %v747_v44 }
 0x251   :  { %v754_v46 = vmul.f32 %v1566_v31, %v752_v20  ;;  %v751_v47 = vadd.f32 -0.28449672, %v749_v45 }
 0x253   :  { %v756_v48 = vadd.f32 0.2548296, %v754_v46  ;;  %v753_v49 = vmul.f32 %v1568_v35, %v751_v47 }
 0x255   :  { %v758_v50 = vmul.f32 %v1566_v31, %v756_v48  ;;  %v755_v52 = vadd.f32 0.2548296, %v753_v49 }
 0x257   :  { %v768_v53 = vmul.f32 %v1570_v51, %v758_v50  ;;  %v757_v17 = vmul.f32 %v1568_v35, %v755_v52 }
 0x259   :  { %v770_v55 = vsub.f32 1.0, %v768_v53  ;;  %v767_v56 = vmul.f32 %v1572_v54, %v757_v17 }
 0x25b   :  { %v774_v12 = vsub.f32 0.0, %v770_v55  ;;  %v769_v57 = vsub.f32 1.0, %v767_v56 }
 0x25d   :  { %v776_v58 = vsel %vm772_vm6, %v774_v12, %v770_v55  ;;  %v773_v59 = vsub.f32 0.0, %v769_v57 }
 0x25e   :  { %v778_v60 = vadd.f32 1.0, %v776_v58 }
 0x25f   :  { %v775_v61 = vsel %vm771_vm7, %v773_v59, %v769_v57 }
 0x260   :  { %v777_v63 = vadd.f32 1.0, %v775_v61  ;;  %v780_v2 = vmul.f32 %v778_v60, %v728_v0 }
 0x262   :  { %v779_v1 = vmul.f32 %v777_v63, %v727_v62 }
 0x264   :  { %1479 = vmatprep.mubr.msk.f32.mxu1 %vm645_vm5, %v779_v1 }
 0x265   :  { %1480 = vmatmul.mubr.msk.f32.vlgmr.msra.gmra.mxu1 %vm645_vm5, %v780_v2  ;;  %v1084_v2 = vld [vmem:[%s1860_s3 + $0xf8] sm:$0xff] }
 0x266   :  { %1501 = vmatprep.subr.mxu1 %v1084_v2 }
 0x267   :  { %1502 = vmatpush3.msra.mxu1 %v1084_v2  ;;  %v1231_v2 = vld [vmem:[%s1864_s4 + $0x30] sm:$0xff] }
 0x268   :  { %1503 = vmatprep.subr.mxu1 %v1083_v4 }
 0x269   :  { %1504 = vmatpush3.msra.mxu1 %v1083_v4  ;;  %v1230_v4 = vld [vmem:[%s1864_s4 + $0x28] sm:$0xff] }
 0x26a   :  { %1505 = vmatprep.subr.mxu1 %v1082_v5 }
 0x26b   :  { %1506 = vmatpush3.msra.mxu1 %v1082_v5  ;;  %v1229_v5 = vld [vmem:[%s1864_s4 + $0x20] sm:$0xff] }
 0x26c   :  { %1507 = vmatprep.subr.mxu1 %v1081_v6 }
 0x26d   :  { %1508 = vmatpush3.msra.mxu1 %v1081_v6  ;;  %v1228_v6 = vld [vmem:[%s1864_s4 + $0x18] sm:$0xff] }
 0x26e   :  { %1509 = vmatprep.subr.mxu1 %v1080_v7 }
 0x26f   :  { %1510 = vmatpush3.msra.mxu1 %v1080_v7  ;;  %v1227_v7 = vld [vmem:[%s1864_s4 + $0x10] sm:$0xff] }
 0x270   :  { %1511 = vmatprep.subr.mxu1 %v1079_v8 }
 0x271   :  { %1512 = vmatpush3.msra.mxu1 %v1079_v8  ;;  %v1226_v8 = vld [vmem:[%s1864_s4 + $0x8] sm:$0xff] }
 0x272   :  { %1513 = vmatprep.subr.mxu1 %v1078_v9 }
 0x273   :  { %1514 = vmatpush3.msra.mxu1 %v1078_v9  ;;  %v1225_v9 = vld [vmem:[%s1864_s4] sm:$0xff] }
 0x274   :  { %1515 = vmatprep.subr.mxu1 %v1077_v10 }
 0x275   :  { %1516 = vmatpush3.msra.mxu1 %v1077_v10  ;;  %v1349_v10 = vld [vmem:[%s1860_s3 + $0x158] ss:$0 sm:$0xff] }
 0x325   :  { %v1481_v14 = vpop.f32.mrf.mxu1 }
 0x326   :  { %v872_v15 = vadd.f32 %v1481_v14, %v1343_v13 }
 0x327   :  { %v866_v16 = vpop.f32.mrf.mxu1 }
 0x328   :  { %v878_v18 = vmul.f32 0.70710677, %v872_v15  ;;  %v867_v3 = vadd.f32 %v1343_v13, %v866_v16  ;;  %v876_v63 = vmul.f32 0.5, %v872_v15 }
 0x32a   :  { %v880_v19 = vand.u32 2147483647, %v878_v18  ;;  %v877_v21 = vmul.f32 0.70710677, %v867_v3  ;;  %vm920_vm8 = vcmp.lt.f32.partialorder %v878_v18, 0.0  ;;  %v875_v61 = vmul.f32 0.5, %v867_v3 }
 0x32c   :  { %v882_v22 = vmul.f32 0.3275911, %v880_v19  ;;  %v879_v23 = vand.u32 2147483647, %v877_v21  ;;  %v908_v27 = vmul.f32 %v880_v19, %v880_v19  ;;  %vm919_vm9 = vcmp.lt.f32.partialorder %v877_v21, 0.0 }
 0x32e   :  { %v884_v24 = vadd.f32 1.0, %v882_v22  ;;  %v881_v25 = vmul.f32 0.3275911, %v879_v23  ;;  %v907_v28 = vmul.f32 %v879_v23, %v879_v23  ;;  %v910_v29 = vsub.f32 0.0, %v908_v27 }
 0x330   :  { %1573 = vrcp.f32 %v884_v24  ;;  %v883_v26 = vadd.f32 1.0, %v881_v25  ;;  %v909_v31 = vsub.f32 0.0, %v907_v28  ;;  %v913_v33 = vmul.f32 1.442695, %v910_v29 }
 0x332   :  { %1575 = vrcp.f32 %v883_v26  ;;  %v911_v37 = vmul.f32 1.442695, %v909_v31 }
 0x333   :  { %1577 = vpow2.f32 %v913_v33 }
 0x334   :  { %1579 = vpow2.f32 %v911_v37 }
 0x33d   :  { %v1574_v30 = vpop.eup %1573 }
 0x33e   :  { %v890_v32 = vmul.f32 1.0614054, %v1574_v30 }
 0x33f   :  { %v1576_v34 = vpop.eup %1575 }
 0x340   :  { %v892_v35 = vadd.f32 -1.4531521, %v890_v32  ;;  %v889_v36 = vmul.f32 1.0614054, %v1576_v34  ;;  %v1578_v50 = vpop.eup %1577 }
 0x341   :  { %v1580_v17 = vpop.eup %1579 }
 0x342   :  { %v894_v38 = vmul.f32 %v1574_v30, %v892_v35  ;;  %v891_v39 = vadd.f32 -1.4531521, %v889_v36 }
 0x344   :  { %v896_v40 = vadd.f32 1.4214138, %v894_v38  ;;  %v893_v41 = vmul.f32 %v1576_v34, %v891_v39 }
 0x346   :  { %v898_v42 = vmul.f32 %v1574_v30, %v896_v40  ;;  %v895_v43 = vadd.f32 1.4214138, %v893_v41 }
 0x348   :  { %v900_v44 = vadd.f32 -0.28449672, %v898_v42  ;;  %v897_v20 = vmul.f32 %v1576_v34, %v895_v43 }
 0x34a   :  { %v902_v45 = vmul.f32 %v1574_v30, %v900_v44  ;;  %v899_v46 = vadd.f32 -0.28449672, %v897_v20 }
 0x34c   :  { %v904_v47 = vadd.f32 0.2548296, %v902_v45  ;;  %v901_v48 = vmul.f32 %v1576_v34, %v899_v46 }
 0x34e   :  { %v906_v49 = vmul.f32 %v1574_v30, %v904_v47  ;;  %v903_v51 = vadd.f32 0.2548296, %v901_v48 }
 0x350   :  { %v916_v52 = vmul.f32 %v1578_v50, %v906_v49  ;;  %v905_v53 = vmul.f32 %v1576_v34, %v903_v51 }
 0x352   :  { %v918_v54 = vsub.f32 1.0, %v916_v52  ;;  %v915_v55 = vmul.f32 %v1580_v17, %v905_v53 }
 0x354   :  { %v922_v56 = vsub.f32 0.0, %v918_v54  ;;  %v917_v12 = vsub.f32 1.0, %v915_v55 }
 0x356   :  { %v924_v57 = vsel %vm920_vm8, %v922_v56, %v918_v54  ;;  %v921_v58 = vsub.f32 0.0, %v917_v12 }
 0x357   :  { %v926_v59 = vadd.f32 1.0, %v924_v57 }
 0x358   :  { %v923_v60 = vsel %vm919_vm9, %v921_v58, %v917_v12 }
 0x359   :  { %v925_v62 = vadd.f32 1.0, %v923_v60  ;;  %v928_v1 = vmul.f32 %v926_v59, %v876_v63 }
 0x35b   :  { %v927_v0 = vmul.f32 %v925_v62, %v875_v61 }
 0x35d   :  { %1498 = vmatprep.mubr.msk.f32.mxu0 %vm645_vm5, %v927_v0 }
 0x35e   :  { %1499 = vmatmul.mubr.msk.f32.vlgmr.msra.gmra.mxu0 %vm645_vm5, %v928_v1  ;;  %v1232_v1 = vld [vmem:[%s1864_s4 + $0x38] sm:$0xff] }
 0x35f   :  { %1520 = vmatprep.subr.mxu0 %v1232_v1 }
 0x360   :  { %1521 = vmatpush3.msra.mxu0 %v1232_v1 }
 0x361   :  { %1522 = vmatprep.subr.mxu0 %v1231_v2 }
 0x362   :  { %1523 = vmatpush3.msra.mxu0 %v1231_v2 }
 0x363   :  { %1524 = vmatprep.subr.mxu0 %v1230_v4 }
 0x364   :  { %1525 = vmatpush3.msra.mxu0 %v1230_v4 }
 0x365   :  { %1526 = vmatprep.subr.mxu0 %v1229_v5 }
 0x366   :  { %1527 = vmatpush3.msra.mxu0 %v1229_v5 }
 0x367   :  { %1528 = vmatprep.subr.mxu0 %v1228_v6 }
 0x368   :  { %1529 = vmatpush3.msra.mxu0 %v1228_v6 }
 0x369   :  { %1530 = vmatprep.subr.mxu0 %v1227_v7 }
 0x36a   :  { %1531 = vmatpush3.msra.mxu0 %v1227_v7 }
 0x36b   :  { %1532 = vmatprep.subr.mxu0 %v1226_v8 }
 0x36c   :  { %1533 = vmatpush3.msra.mxu0 %v1226_v8 }
 0x36d   :  { %1534 = vmatprep.subr.mxu0 %v1225_v9 }
 0x36e   :  { %1535 = vmatpush3.msra.mxu0 %v1225_v9 }
 0x41e   :  { %v1500_v13 = vpop.f32.mrf.mxu0 }
 0x41f   :  { %v1020_v14 = vadd.f32 %v1500_v13, %v1346_v11 }
 0x420   :  { %v1014_v15 = vpop.f32.mrf.mxu0 }
 0x421   :  { %v1026_v16 = vmul.f32 0.70710677, %v1020_v14  ;;  %v1015_v18 = vadd.f32 %v1346_v11, %v1014_v15  ;;  %v1024_v62 = vmul.f32 0.5, %v1020_v14 }
 0x423   :  { %v1028_v3 = vand.u32 2147483647, %v1026_v16  ;;  %v1025_v19 = vmul.f32 0.70710677, %v1015_v18  ;;  %vm1068_vm10 = vcmp.lt.f32.partialorder %v1026_v16, 0.0  ;;  %v1023_v60 = vmul.f32 0.5, %v1015_v18 }
 0x425   :  { %v1030_v21 = vmul.f32 0.3275911, %v1028_v3  ;;  %v1027_v22 = vand.u32 2147483647, %v1025_v19  ;;  %v1056_v26 = vmul.f32 %v1028_v3, %v1028_v3  ;;  %vm1067_vm11 = vcmp.lt.f32.partialorder %v1025_v19, 0.0 }
 0x427   :  { %v1032_v23 = vadd.f32 1.0, %v1030_v21  ;;  %v1029_v24 = vmul.f32 0.3275911, %v1027_v22  ;;  %v1055_v27 = vmul.f32 %v1027_v22, %v1027_v22  ;;  %v1058_v28 = vsub.f32 0.0, %v1056_v26 }
 0x429   :  { %1581 = vrcp.f32 %v1032_v23  ;;  %v1031_v25 = vadd.f32 1.0, %v1029_v24  ;;  %v1057_v30 = vsub.f32 0.0, %v1055_v27  ;;  %v1061_v32 = vmul.f32 1.442695, %v1058_v28 }
 0x42b   :  { %1583 = vrcp.f32 %v1031_v25  ;;  %v1059_v36 = vmul.f32 1.442695, %v1057_v30 }
 0x42c   :  { %1585 = vpow2.f32 %v1061_v32 }
 0x42d   :  { %1587 = vpow2.f32 %v1059_v36 }
 0x436   :  { %v1582_v29 = vpop.eup %1581 }
 0x437   :  { %v1038_v31 = vmul.f32 1.0614054, %v1582_v29 }
 0x438   :  { %v1584_v33 = vpop.eup %1583 }
 0x439   :  { %v1040_v34 = vadd.f32 -1.4531521, %v1038_v31  ;;  %v1037_v35 = vmul.f32 1.0614054, %v1584_v33  ;;  %v1586_v49 = vpop.eup %1585 }
 0x43a   :  { %v1588_v53 = vpop.eup %1587 }
 0x43b   :  { %v1042_v37 = vmul.f32 %v1582_v29, %v1040_v34  ;;  %v1039_v38 = vadd.f32 -1.4531521, %v1037_v35 }
 0x43d   :  { %v1044_v39 = vadd.f32 1.4214138, %v1042_v37  ;;  %v1041_v40 = vmul.f32 %v1584_v33, %v1039_v38 }
 0x43f   :  { %v1046_v41 = vmul.f32 %v1582_v29, %v1044_v39  ;;  %v1043_v42 = vadd.f32 1.4214138, %v1041_v40 }
 0x441   :  { %v1048_v43 = vadd.f32 -0.28449672, %v1046_v41  ;;  %v1045_v44 = vmul.f32 %v1584_v33, %v1043_v42 }
 0x443   :  { %v1050_v20 = vmul.f32 %v1582_v29, %v1048_v43  ;;  %v1047_v45 = vadd.f32 -0.28449672, %v1045_v44 }
 0x445   :  { %v1052_v46 = vadd.f32 0.2548296, %v1050_v20  ;;  %v1049_v47 = vmul.f32 %v1584_v33, %v1047_v45 }
 0x447   :  { %v1054_v48 = vmul.f32 %v1582_v29, %v1052_v46  ;;  %v1051_v50 = vadd.f32 0.2548296, %v1049_v47 }
 0x449   :  { %v1064_v51 = vmul.f32 %v1586_v49, %v1054_v48  ;;  %v1053_v52 = vmul.f32 %v1584_v33, %v1051_v50 }
 0x44b   :  { %v1066_v17 = vsub.f32 1.0, %v1064_v51  ;;  %v1063_v54 = vmul.f32 %v1588_v53, %v1053_v52 }
 0x44d   :  { %v1070_v55 = vsub.f32 0.0, %v1066_v17  ;;  %v1065_v56 = vsub.f32 1.0, %v1063_v54 }
 0x44f   :  { %v1072_v12 = vsel %vm1068_vm10, %v1070_v55, %v1066_v17  ;;  %v1069_v57 = vsub.f32 0.0, %v1065_v56 }
 0x450   :  { %v1074_v58 = vadd.f32 1.0, %v1072_v12 }
 0x451   :  { %v1071_v59 = vsel %vm1067_vm11, %v1069_v57, %v1065_v56 }
 0x452   :  { %v1073_v61 = vadd.f32 1.0, %v1071_v59  ;;  %v1076_v0 = vmul.f32 %v1074_v58, %v1024_v62 }
 0x454   :  { %v1075_v63 = vmul.f32 %v1073_v61, %v1023_v60 }
 0x456   :  { %1517 = vmatprep.mubr.msk.f32.mxu1 %vm645_vm5, %v1075_v63 }
 0x457   :  { %1518 = vmatmul.mubr.msk.f32.vlgmr.msra.gmra.mxu1 %vm645_vm5, %v1076_v0  ;;  %v1352_v0 = vld [vmem:[%s1864_s4 + $0x40] ss:$0 sm:$0xff] }
 0x517   :  { %v1519_v11 = vpop.f32.mrf.mxu1 }
 0x518   :  { %v1168_v13 = vadd.f32 %v1519_v11, %v1349_v10 }
 0x519   :  { %v1162_v14 = vpop.f32.mrf.mxu1 }
 0x51a   :  { %v1174_v15 = vmul.f32 0.70710677, %v1168_v13  ;;  %v1163_v16 = vadd.f32 %v1349_v10, %v1162_v14  ;;  %v1172_v61 = vmul.f32 0.5, %v1168_v13 }
 0x51c   :  { %v1176_v18 = vand.u32 2147483647, %v1174_v15  ;;  %v1173_v3 = vmul.f32 0.70710677, %v1163_v16  ;;  %vm1216_vm12 = vcmp.lt.f32.partialorder %v1174_v15, 0.0  ;;  %v1171_v59 = vmul.f32 0.5, %v1163_v16 }
 0x51e   :  { %v1178_v19 = vmul.f32 0.3275911, %v1176_v18  ;;  %v1175_v21 = vand.u32 2147483647, %v1173_v3  ;;  %v1204_v25 = vmul.f32 %v1176_v18, %v1176_v18  ;;  %vm1215_vm13 = vcmp.lt.f32.partialorder %v1173_v3, 0.0 }
 0x520   :  { %v1180_v22 = vadd.f32 1.0, %v1178_v19  ;;  %v1177_v23 = vmul.f32 0.3275911, %v1175_v21  ;;  %v1203_v26 = vmul.f32 %v1175_v21, %v1175_v21  ;;  %v1206_v27 = vsub.f32 0.0, %v1204_v25 }
 0x522   :  { %1589 = vrcp.f32 %v1180_v22  ;;  %v1179_v24 = vadd.f32 1.0, %v1177_v23  ;;  %v1205_v29 = vsub.f32 0.0, %v1203_v26  ;;  %v1209_v31 = vmul.f32 1.442695, %v1206_v27 }
 0x524   :  { %1591 = vrcp.f32 %v1179_v24  ;;  %v1207_v35 = vmul.f32 1.442695, %v1205_v29 }
 0x525   :  { %1593 = vpow2.f32 %v1209_v31 }
 0x526   :  { %1595 = vpow2.f32 %v1207_v35 }
 0x52f   :  { %v1590_v28 = vpop.eup %1589 }
 0x530   :  { %v1186_v30 = vmul.f32 1.0614054, %v1590_v28 }
 0x531   :  { %v1592_v32 = vpop.eup %1591 }
 0x532   :  { %v1188_v33 = vadd.f32 -1.4531521, %v1186_v30  ;;  %v1185_v34 = vmul.f32 1.0614054, %v1592_v32  ;;  %v1594_v48 = vpop.eup %1593 }
 0x533   :  { %v1596_v52 = vpop.eup %1595 }
 0x534   :  { %v1190_v36 = vmul.f32 %v1590_v28, %v1188_v33  ;;  %v1187_v37 = vadd.f32 -1.4531521, %v1185_v34 }
 0x536   :  { %v1192_v38 = vadd.f32 1.4214138, %v1190_v36  ;;  %v1189_v39 = vmul.f32 %v1592_v32, %v1187_v37 }
 0x538   :  { %v1194_v40 = vmul.f32 %v1590_v28, %v1192_v38  ;;  %v1191_v41 = vadd.f32 1.4214138, %v1189_v39 }
 0x53a   :  { %v1196_v42 = vadd.f32 -0.28449672, %v1194_v40  ;;  %v1193_v43 = vmul.f32 %v1592_v32, %v1191_v41 }
 0x53c   :  { %v1198_v44 = vmul.f32 %v1590_v28, %v1196_v42  ;;  %v1195_v20 = vadd.f32 -0.28449672, %v1193_v43 }
 0x53e   :  { %v1200_v45 = vadd.f32 0.2548296, %v1198_v44  ;;  %v1197_v46 = vmul.f32 %v1592_v32, %v1195_v20 }
 0x540   :  { %v1202_v47 = vmul.f32 %v1590_v28, %v1200_v45  ;;  %v1199_v49 = vadd.f32 0.2548296, %v1197_v46 }
 0x542   :  { %v1212_v50 = vmul.f32 %v1594_v48, %v1202_v47  ;;  %v1201_v51 = vmul.f32 %v1592_v32, %v1199_v49 }
 0x544   :  { %v1214_v53 = vsub.f32 1.0, %v1212_v50  ;;  %v1211_v17 = vmul.f32 %v1596_v52, %v1201_v51 }
 0x546   :  { %v1218_v54 = vsub.f32 0.0, %v1214_v53  ;;  %v1213_v55 = vsub.f32 1.0, %v1211_v17 }
 0x548   :  { %v1220_v56 = vsel %vm1216_vm12, %v1218_v54, %v1214_v53  ;;  %v1217_v12 = vsub.f32 0.0, %v1213_v55 }
 0x549   :  { %v1222_v57 = vadd.f32 1.0, %v1220_v56 }
 0x54a   :  { %v1219_v58 = vsel %vm1215_vm13, %v1217_v12, %v1213_v55 }
 0x54b   :  { %v1221_v60 = vadd.f32 1.0, %v1219_v58  ;;  %v1224_v63 = vmul.f32 %v1222_v57, %v1172_v61 }
 0x54d   :  { %v1223_v62 = vmul.f32 %v1221_v60, %v1171_v59 }
 0x54f   :  { %1536 = vmatprep.mubr.msk.f32.mxu0 %vm645_vm5, %v1223_v62 }
 0x550   :  { %1537 = vmatmul.mubr.msk.f32.vlgmr.msra.gmra.mxu0 %vm645_vm5, %v1224_v63 }
 0x610   :  { %v1538_v1 = vpop.f32.mrf.mxu0 }
 0x611   :  { %v1316_v2 = vadd.f32 %v1538_v1, %v1352_v0 }
 0x612   :  { %v1310_v4 = vpop.f32.mrf.mxu0 }
 0x613   :  { %1320 = vst [vmem:[%s1865_s5 + $0x8] sm:$0xff] %v1316_v2  ;;  %v1311_v5 = vadd.f32 %v1352_v0, %v1310_v4 }
 0x615   :  { %1319 = vst [vmem:[%s1865_s5] sm:$0xff] %v1311_v5 }

</bundles_post_ra>
